<compile_context>
chip_gen: v5e
topology: v5e:2x2
jax: 0.10.0
libtpu: 0.0.40
codegen_flags: <defaults>
</compile_context>

<pallas_src>
import jax
import jax.numpy as jnp
from jax.experimental import pallas as pl
from jax.experimental.pallas import tpu as pltpu


NEG_INF = -1e30  # bias on padded (fake) classes -> exp() underflows to 0


def lstm_tagger_kernel(ids_ref, emb_ref, wih_ref, whh_ref, b_ref,
                       wout_ref, bout_ref, out_ref):
    """Single-invocation kernel (no grid).

    ids_ref  : (S,)    int32 token ids (SMEM)
    emb_ref  : (V, E)  f32 embedding table (VMEM)
    wih_ref  : (E, 4H) bf16 input->gate weights (gates packed i|f|g|o)
    whh_ref  : (H, 4H) bf16 hidden->gate weights
    b_ref    : (1, 4H) f32 b_ih + b_hh
    wout_ref : (H, CP) bf16 hidden2tag weight, class lanes >= C are zero
    bout_ref : (1, CP) f32 hidden2tag bias, padded classes = -1e30
    out_ref  : (S, CP) f32 log-softmax tag scores (real classes in [:, :C])
    """
    S = out_ref.shape[0]
    H = whh_ref.shape[0]

    # --- fused embedding lookup: dynamic row loads driven by SMEM scalars ---
    rows = [emb_ref[pl.ds(ids_ref[t], 1), :] for t in range(S)]
    x = jnp.concatenate(rows, axis=0)                                  # (S, E)

    # Input contribution to all gates for every timestep: one MXU matmul.
    xg = jnp.dot(x.astype(jnp.bfloat16), wih_ref[...],
                 preferred_element_type=jnp.float32) + b_ref[...]      # (S, 4H)

    h = jnp.zeros((1, H), jnp.float32)
    c = jnp.zeros((1, H), jnp.float32)
    hs = []
    # Fully unrolled recurrence; h/c live in vregs, never round-trip VMEM.
    # (The true h/c dependence still serializes the per-step MXU work.)
    for t in range(S):
        gates = xg[t:t + 1, :] + jnp.dot(
            h.astype(jnp.bfloat16), whh_ref[...],
            preferred_element_type=jnp.float32)                        # (1, 4H)
        sig = jax.nn.sigmoid(gates)   # one EUP pass over the packed gate row
        tnh = jnp.tanh(gates)         # one EUP pass over the packed gate row
        i_g = sig[:, 0 * H:1 * H]     # PyTorch gate order: i, f, g, o
        f_g = sig[:, 1 * H:2 * H]
        g_g = tnh[:, 2 * H:3 * H]
        o_g = sig[:, 3 * H:4 * H]
        c = f_g * c + i_g * g_g                                        # f32 VPU
        h = o_g * jnp.tanh(c)         # third EUP pass, only H lanes
        hs.append(h)

    h_all = jnp.concatenate(hs, axis=0)                                # (S, H)

    # hidden2tag + log_softmax over the class lanes (all f32 epilogue math).
    tag = jnp.dot(h_all.astype(jnp.bfloat16), wout_ref[...],
                  preferred_element_type=jnp.float32) + bout_ref[...]  # (S, CP)
    m = jnp.max(tag, axis=-1, keepdims=True)
    z = tag - m
    lse = jnp.log(jnp.sum(jnp.exp(z), axis=-1, keepdims=True))
    out_ref[...] = z - lse


def _round_up(x, m):
    return ((x + m - 1) // m) * m


def prepare_kernel_params(raw):
    """Repack PyTorch-layout weights into the kernel layout (bf16 MXU operands)."""
    w_ih = raw["w_ih"]          # (4H, E)
    w_hh = raw["w_hh"]          # (4H, H)
    b = raw["b_ih"] + raw["b_hh"]   # (4H,)
    w_out = raw["w_out"]        # (C, H)
    b_out = raw["b_out"]        # (C,)

    H = w_hh.shape[1]
    C = w_out.shape[0]
    CP = _round_up(max(C, 1), 128)   # lane-dense output + exact log_softmax pad

    w_out_p = jnp.zeros((H, CP), jnp.float32).at[:, :C].set(
        w_out.T.astype(jnp.float32))
    b_out_p = jnp.full((1, CP), NEG_INF, jnp.float32).at[0, :C].set(
        b_out.astype(jnp.float32))

    return {
        "embedding": raw["embedding"].astype(jnp.float32),   # gathered in f32
        "w_ih_t": w_ih.T.astype(jnp.bfloat16),               # (E, 4H)
        "w_hh_t": w_hh.T.astype(jnp.bfloat16),               # (H, 4H)
        "b": b.reshape(1, -1).astype(jnp.float32),           # (1, 4H)
        "w_out_p": w_out_p.astype(jnp.bfloat16),             # (H, CP)
        "b_out_p": b_out_p,                                   # (1, CP) f32
        "num_classes": C,
    }


def lstm_tagger_forward(sentence, kp):
    """sentence: (S,) int32 token ids -> (S, C) log tag scores."""
    S = sentence.shape[0]
    CP = kp["w_out_p"].shape[1]
    C = kp["num_classes"]

    smem = pl.BlockSpec(memory_space=pltpu.MemorySpace.SMEM)
    vmem = pl.BlockSpec(memory_space=pltpu.MemorySpace.VMEM)

    out_padded = pl.pallas_call(
        lstm_tagger_kernel,
        out_shape=jax.ShapeDtypeStruct((S, CP), jnp.float32),
        in_specs=[smem, vmem, vmem, vmem, vmem, vmem, vmem],
        out_specs=vmem,
    )(sentence.astype(jnp.int32), kp["embedding"], kp["w_ih_t"],
      kp["w_hh_t"], kp["b"], kp["w_out_p"], kp["b_out_p"])

    return out_padded[:, :C]


def reference_forward(sentence, raw):
    """Pure-JAX f32 reference with PyTorch LSTMTagger semantics."""
    x = raw["embedding"][sentence]
    S = x.shape[0]
    H = raw["w_hh"].shape[1]
    w_ih_t = raw["w_ih"].T
    w_hh_t = raw["w_hh"].T
    b = (raw["b_ih"] + raw["b_hh"]).reshape(1, -1)
    h = jnp.zeros((1, H), jnp.float32)
    c = jnp.zeros((1, H), jnp.float32)
    hs = []
    for t in range(S):
        gates = x[t:t + 1] @ w_ih_t + b + h @ w_hh_t
        i = jax.nn.sigmoid(gates[:, 0:H])
        f = jax.nn.sigmoid(gates[:, H:2 * H])
        g = jnp.tanh(gates[:, 2 * H:3 * H])
        o = jax.nn.sigmoid(gates[:, 3 * H:4 * H])
        c = f * c + i * g
        h = o * jnp.tanh(c)
        hs.append(h)
    h_all = jnp.concatenate(hs, axis=0)
    tag = h_all @ raw["w_out"].T + raw["b_out"].reshape(1, -1)
    return jax.nn.log_softmax(tag, axis=1)


def init_raw_params(key, vocab_size, embedding_dim, hidden_dim, num_classes):
    ks = jax.random.split(key, 7)
    scale = 0.1
    return {
        "embedding": jax.random.normal(
            ks[0], (vocab_size, embedding_dim), jnp.float32),
        "w_ih": scale * jax.random.normal(
            ks[1], (4 * hidden_dim, embedding_dim), jnp.float32),
        "w_hh": scale * jax.random.normal(
            ks[2], (4 * hidden_dim, hidden_dim), jnp.float32),
        "b_ih": scale * jax.random.normal(ks[3], (4 * hidden_dim,), jnp.float32),
        "b_hh": scale * jax.random.normal(ks[4], (4 * hidden_dim,), jnp.float32),
        "w_out": scale * jax.random.normal(
            ks[5], (num_classes, hidden_dim), jnp.float32),
        "b_out": scale * jax.random.normal(ks[6], (num_classes,), jnp.float32),
    }


if __name__ == "__main__":
    SEQ = 8
    VOCAB = 16
    EMBED = 32
    HIDDEN = 32
    NUM_CLASSES = 8

    key = jax.random.PRNGKey(0)
    k_param, k_tok = jax.random.split(key)
    raw = init_raw_params(k_param, VOCAB, EMBED, HIDDEN, NUM_CLASSES)
    kparams = prepare_kernel_params(raw)
    sentence = jax.random.randint(k_tok, (SEQ,), 0, VOCAB, dtype=jnp.int32)

    out = lstm_tagger_forward(sentence, kparams)
    out = jax.block_until_ready(out)

    ref = reference_forward(sentence, raw)
    assert out.shape == (SEQ, NUM_CLASSES)
    # bf16 MXU operands with f32 accumulation -> loosened tolerance vs f32 ref.
    assert jnp.allclose(out, ref, atol=2e-2, rtol=2e-2), "mismatch vs reference"

    print("KERNEL_OK")
</pallas_src>

<mosaic_0001>
module attributes {stable_mosaic.version = 11 : i64} {
  func.func @lstm_tagger_kernel(%arg0: memref<8xi32, #tpu.memory_space<smem>>, %arg1: memref<16x32xf32, #tpu.memory_space<vmem>>, %arg2: memref<32x128xbf16, #tpu.memory_space<vmem>>, %arg3: memref<32x128xbf16, #tpu.memory_space<vmem>>, %arg4: memref<1x128xf32, #tpu.memory_space<vmem>>, %arg5: memref<32x128xbf16, #tpu.memory_space<vmem>>, %arg6: memref<1x128xf32, #tpu.memory_space<vmem>>, %arg7: memref<8x128xf32, #tpu.memory_space<vmem>>) attributes {dimension_semantics = [], scalar_prefetch = 0 : i64, scratch_operands = 0 : i64, tpu.core_type = #tpu.core_type<tc>} {
    %c0 = arith.constant 0 : index
    %0 = memref.load %arg0[%c0] : memref<8xi32, #tpu.memory_space<smem>>
    %1 = arith.index_cast %0 : i32 to index
    %c0_0 = arith.constant 0 : index
    %2 = vector.load %arg1[%1, %c0_0] : memref<16x32xf32, #tpu.memory_space<vmem>>, vector<1x32xf32>
    %c1 = arith.constant 1 : index
    %3 = memref.load %arg0[%c1] : memref<8xi32, #tpu.memory_space<smem>>
    %4 = arith.index_cast %3 : i32 to index
    %c0_1 = arith.constant 0 : index
    %5 = vector.load %arg1[%4, %c0_1] : memref<16x32xf32, #tpu.memory_space<vmem>>, vector<1x32xf32>
    %c2 = arith.constant 2 : index
    %6 = memref.load %arg0[%c2] : memref<8xi32, #tpu.memory_space<smem>>
    %7 = arith.index_cast %6 : i32 to index
    %c0_2 = arith.constant 0 : index
    %8 = vector.load %arg1[%7, %c0_2] : memref<16x32xf32, #tpu.memory_space<vmem>>, vector<1x32xf32>
    %c3 = arith.constant 3 : index
    %9 = memref.load %arg0[%c3] : memref<8xi32, #tpu.memory_space<smem>>
    %10 = arith.index_cast %9 : i32 to index
    %c0_3 = arith.constant 0 : index
    %11 = vector.load %arg1[%10, %c0_3] : memref<16x32xf32, #tpu.memory_space<vmem>>, vector<1x32xf32>
    %c4 = arith.constant 4 : index
    %12 = memref.load %arg0[%c4] : memref<8xi32, #tpu.memory_space<smem>>
    %13 = arith.index_cast %12 : i32 to index
    %c0_4 = arith.constant 0 : index
    %14 = vector.load %arg1[%13, %c0_4] : memref<16x32xf32, #tpu.memory_space<vmem>>, vector<1x32xf32>
    %c5 = arith.constant 5 : index
    %15 = memref.load %arg0[%c5] : memref<8xi32, #tpu.memory_space<smem>>
    %16 = arith.index_cast %15 : i32 to index
    %c0_5 = arith.constant 0 : index
    %17 = vector.load %arg1[%16, %c0_5] : memref<16x32xf32, #tpu.memory_space<vmem>>, vector<1x32xf32>
    %c6 = arith.constant 6 : index
    %18 = memref.load %arg0[%c6] : memref<8xi32, #tpu.memory_space<smem>>
    %19 = arith.index_cast %18 : i32 to index
    %c0_6 = arith.constant 0 : index
    %20 = vector.load %arg1[%19, %c0_6] : memref<16x32xf32, #tpu.memory_space<vmem>>, vector<1x32xf32>
    %c7 = arith.constant 7 : index
    %21 = memref.load %arg0[%c7] : memref<8xi32, #tpu.memory_space<smem>>
    %22 = arith.index_cast %21 : i32 to index
    %c0_7 = arith.constant 0 : index
    %23 = vector.load %arg1[%22, %c0_7] : memref<16x32xf32, #tpu.memory_space<vmem>>, vector<1x32xf32>
    %24 = tpu.concatenate %2, %5, %8, %11, %14, %17, %20, %23 in 0 : vector<1x32xf32>, vector<1x32xf32>, vector<1x32xf32>, vector<1x32xf32>, vector<1x32xf32>, vector<1x32xf32>, vector<1x32xf32>, vector<1x32xf32> -> vector<8x32xf32>
    %25 = arith.truncf %24 : vector<8x32xf32> to vector<8x32xbf16>
    %c0_8 = arith.constant 0 : index
    %c0_9 = arith.constant 0 : index
    %26 = vector.load %arg2[%c0_8, %c0_9] : memref<32x128xbf16, #tpu.memory_space<vmem>>, vector<32x128xbf16>
    %cst = arith.constant dense<0.000000e+00> : vector<8x128xf32>
    %27 = tpu.matmul %25, %26, %cst {dimension_numbers = #tpu.dot_dimension_numbers<[1], [0], [0], [1], [0, 0, 1, 1], [], []>} : vector<8x32xbf16>, vector<32x128xbf16>, vector<8x128xf32> -> vector<8x128xf32>
    %c0_10 = arith.constant 0 : index
    %c0_11 = arith.constant 0 : index
    %28 = vector.load %arg4[%c0_10, %c0_11] : memref<1x128xf32, #tpu.memory_space<vmem>>, vector<1x128xf32>
    %29 = vector.broadcast %28 : vector<1x128xf32> to vector<8x128xf32>
    %30 = arith.addf %27, %29 : vector<8x128xf32>
    %cst_12 = arith.constant 0.000000e+00 : f32
    %31 = vector.broadcast %cst_12 : f32 to vector<1x32xf32>
    %cst_13 = arith.constant 0.000000e+00 : f32
    %32 = vector.broadcast %cst_13 : f32 to vector<1x32xf32>
    %33 = vector.extract_strided_slice %30 {offsets = [0, 0], sizes = [1, 128], strides = [1, 1]} : vector<8x128xf32> to vector<1x128xf32>
    %34 = arith.truncf %31 : vector<1x32xf32> to vector<1x32xbf16>
    %c0_14 = arith.constant 0 : index
    %c0_15 = arith.constant 0 : index
    %35 = vector.load %arg3[%c0_14, %c0_15] : memref<32x128xbf16, #tpu.memory_space<vmem>>, vector<32x128xbf16>
    %cst_16 = arith.constant dense<0.000000e+00> : vector<1x128xf32>
    %36 = tpu.matmul %34, %35, %cst_16 {dimension_numbers = #tpu.dot_dimension_numbers<[1], [0], [0], [1], [0, 0, 1, 1], [], []>} : vector<1x32xbf16>, vector<32x128xbf16>, vector<1x128xf32> -> vector<1x128xf32>
    %37 = arith.addf %33, %36 : vector<1x128xf32>
    %38 = arith.negf %37 : vector<1x128xf32>
    %39 = math.exp %38 : vector<1x128xf32>
    %cst_17 = arith.constant 1.000000e+00 : f32
    %40 = vector.broadcast %cst_17 : f32 to vector<1x128xf32>
    %41 = arith.addf %40, %39 : vector<1x128xf32>
    %42 = arith.divf %40, %41 : vector<1x128xf32>
    %43 = math.tanh %37 : vector<1x128xf32>
    %44 = vector.extract_strided_slice %42 {offsets = [0, 0], sizes = [1, 32], strides = [1, 1]} : vector<1x128xf32> to vector<1x32xf32>
    %45 = vector.extract_strided_slice %42 {offsets = [0, 32], sizes = [1, 32], strides = [1, 1]} : vector<1x128xf32> to vector<1x32xf32>
    %46 = vector.extract_strided_slice %43 {offsets = [0, 64], sizes = [1, 32], strides = [1, 1]} : vector<1x128xf32> to vector<1x32xf32>
    %47 = vector.extract_strided_slice %42 {offsets = [0, 96], sizes = [1, 32], strides = [1, 1]} : vector<1x128xf32> to vector<1x32xf32>
    %48 = arith.mulf %45, %32 : vector<1x32xf32>
    %49 = arith.mulf %44, %46 : vector<1x32xf32>
    %50 = arith.addf %48, %49 : vector<1x32xf32>
    %51 = math.tanh %50 : vector<1x32xf32>
    %52 = arith.mulf %47, %51 : vector<1x32xf32>
    %53 = vector.extract_strided_slice %30 {offsets = [1, 0], sizes = [1, 128], strides = [1, 1]} : vector<8x128xf32> to vector<1x128xf32>
    %54 = arith.truncf %52 : vector<1x32xf32> to vector<1x32xbf16>
    %c0_18 = arith.constant 0 : index
    %c0_19 = arith.constant 0 : index
    %55 = vector.load %arg3[%c0_18, %c0_19] : memref<32x128xbf16, #tpu.memory_space<vmem>>, vector<32x128xbf16>
    %cst_20 = arith.constant dense<0.000000e+00> : vector<1x128xf32>
    %56 = tpu.matmul %54, %55, %cst_20 {dimension_numbers = #tpu.dot_dimension_numbers<[1], [0], [0], [1], [0, 0, 1, 1], [], []>} : vector<1x32xbf16>, vector<32x128xbf16>, vector<1x128xf32> -> vector<1x128xf32>
    %57 = arith.addf %53, %56 : vector<1x128xf32>
    %58 = arith.negf %57 : vector<1x128xf32>
    %59 = math.exp %58 : vector<1x128xf32>
    %cst_21 = arith.constant 1.000000e+00 : f32
    %60 = vector.broadcast %cst_21 : f32 to vector<1x128xf32>
    %61 = arith.addf %60, %59 : vector<1x128xf32>
    %62 = arith.divf %60, %61 : vector<1x128xf32>
    %63 = math.tanh %57 : vector<1x128xf32>
    %64 = vector.extract_strided_slice %62 {offsets = [0, 0], sizes = [1, 32], strides = [1, 1]} : vector<1x128xf32> to vector<1x32xf32>
    %65 = vector.extract_strided_slice %62 {offsets = [0, 32], sizes = [1, 32], strides = [1, 1]} : vector<1x128xf32> to vector<1x32xf32>
    %66 = vector.extract_strided_slice %63 {offsets = [0, 64], sizes = [1, 32], strides = [1, 1]} : vector<1x128xf32> to vector<1x32xf32>
    %67 = vector.extract_strided_slice %62 {offsets = [0, 96], sizes = [1, 32], strides = [1, 1]} : vector<1x128xf32> to vector<1x32xf32>
    %68 = arith.mulf %65, %50 : vector<1x32xf32>
    %69 = arith.mulf %64, %66 : vector<1x32xf32>
    %70 = arith.addf %68, %69 : vector<1x32xf32>
    %71 = math.tanh %70 : vector<1x32xf32>
    %72 = arith.mulf %67, %71 : vector<1x32xf32>
    %73 = vector.extract_strided_slice %30 {offsets = [2, 0], sizes = [1, 128], strides = [1, 1]} : vector<8x128xf32> to vector<1x128xf32>
    %74 = arith.truncf %72 : vector<1x32xf32> to vector<1x32xbf16>
    %c0_22 = arith.constant 0 : index
    %c0_23 = arith.constant 0 : index
    %75 = vector.load %arg3[%c0_22, %c0_23] : memref<32x128xbf16, #tpu.memory_space<vmem>>, vector<32x128xbf16>
    %cst_24 = arith.constant dense<0.000000e+00> : vector<1x128xf32>
    %76 = tpu.matmul %74, %75, %cst_24 {dimension_numbers = #tpu.dot_dimension_numbers<[1], [0], [0], [1], [0, 0, 1, 1], [], []>} : vector<1x32xbf16>, vector<32x128xbf16>, vector<1x128xf32> -> vector<1x128xf32>
    %77 = arith.addf %73, %76 : vector<1x128xf32>
    %78 = arith.negf %77 : vector<1x128xf32>
    %79 = math.exp %78 : vector<1x128xf32>
    %cst_25 = arith.constant 1.000000e+00 : f32
    %80 = vector.broadcast %cst_25 : f32 to vector<1x128xf32>
    %81 = arith.addf %80, %79 : vector<1x128xf32>
    %82 = arith.divf %80, %81 : vector<1x128xf32>
    %83 = math.tanh %77 : vector<1x128xf32>
    %84 = vector.extract_strided_slice %82 {offsets = [0, 0], sizes = [1, 32], strides = [1, 1]} : vector<1x128xf32> to vector<1x32xf32>
    %85 = vector.extract_strided_slice %82 {offsets = [0, 32], sizes = [1, 32], strides = [1, 1]} : vector<1x128xf32> to vector<1x32xf32>
    %86 = vector.extract_strided_slice %83 {offsets = [0, 64], sizes = [1, 32], strides = [1, 1]} : vector<1x128xf32> to vector<1x32xf32>
    %87 = vector.extract_strided_slice %82 {offsets = [0, 96], sizes = [1, 32], strides = [1, 1]} : vector<1x128xf32> to vector<1x32xf32>
    %88 = arith.mulf %85, %70 : vector<1x32xf32>
    %89 = arith.mulf %84, %86 : vector<1x32xf32>
    %90 = arith.addf %88, %89 : vector<1x32xf32>
    %91 = math.tanh %90 : vector<1x32xf32>
    %92 = arith.mulf %87, %91 : vector<1x32xf32>
    %93 = vector.extract_strided_slice %30 {offsets = [3, 0], sizes = [1, 128], strides = [1, 1]} : vector<8x128xf32> to vector<1x128xf32>
    %94 = arith.truncf %92 : vector<1x32xf32> to vector<1x32xbf16>
    %c0_26 = arith.constant 0 : index
    %c0_27 = arith.constant 0 : index
    %95 = vector.load %arg3[%c0_26, %c0_27] : memref<32x128xbf16, #tpu.memory_space<vmem>>, vector<32x128xbf16>
    %cst_28 = arith.constant dense<0.000000e+00> : vector<1x128xf32>
    %96 = tpu.matmul %94, %95, %cst_28 {dimension_numbers = #tpu.dot_dimension_numbers<[1], [0], [0], [1], [0, 0, 1, 1], [], []>} : vector<1x32xbf16>, vector<32x128xbf16>, vector<1x128xf32> -> vector<1x128xf32>
    %97 = arith.addf %93, %96 : vector<1x128xf32>
    %98 = arith.negf %97 : vector<1x128xf32>
    %99 = math.exp %98 : vector<1x128xf32>
    %cst_29 = arith.constant 1.000000e+00 : f32
    %100 = vector.broadcast %cst_29 : f32 to vector<1x128xf32>
    %101 = arith.addf %100, %99 : vector<1x128xf32>
    %102 = arith.divf %100, %101 : vector<1x128xf32>
    %103 = math.tanh %97 : vector<1x128xf32>
    %104 = vector.extract_strided_slice %102 {offsets = [0, 0], sizes = [1, 32], strides = [1, 1]} : vector<1x128xf32> to vector<1x32xf32>
    %105 = vector.extract_strided_slice %102 {offsets = [0, 32], sizes = [1, 32], strides = [1, 1]} : vector<1x128xf32> to vector<1x32xf32>
    %106 = vector.extract_strided_slice %103 {offsets = [0, 64], sizes = [1, 32], strides = [1, 1]} : vector<1x128xf32> to vector<1x32xf32>
    %107 = vector.extract_strided_slice %102 {offsets = [0, 96], sizes = [1, 32], strides = [1, 1]} : vector<1x128xf32> to vector<1x32xf32>
    %108 = arith.mulf %105, %90 : vector<1x32xf32>
    %109 = arith.mulf %104, %106 : vector<1x32xf32>
    %110 = arith.addf %108, %109 : vector<1x32xf32>
    %111 = math.tanh %110 : vector<1x32xf32>
    %112 = arith.mulf %107, %111 : vector<1x32xf32>
    %113 = vector.extract_strided_slice %30 {offsets = [4, 0], sizes = [1, 128], strides = [1, 1]} : vector<8x128xf32> to vector<1x128xf32>
    %114 = arith.truncf %112 : vector<1x32xf32> to vector<1x32xbf16>
    %c0_30 = arith.constant 0 : index
    %c0_31 = arith.constant 0 : index
    %115 = vector.load %arg3[%c0_30, %c0_31] : memref<32x128xbf16, #tpu.memory_space<vmem>>, vector<32x128xbf16>
    %cst_32 = arith.constant dense<0.000000e+00> : vector<1x128xf32>
    %116 = tpu.matmul %114, %115, %cst_32 {dimension_numbers = #tpu.dot_dimension_numbers<[1], [0], [0], [1], [0, 0, 1, 1], [], []>} : vector<1x32xbf16>, vector<32x128xbf16>, vector<1x128xf32> -> vector<1x128xf32>
    %117 = arith.addf %113, %116 : vector<1x128xf32>
    %118 = arith.negf %117 : vector<1x128xf32>
    %119 = math.exp %118 : vector<1x128xf32>
    %cst_33 = arith.constant 1.000000e+00 : f32
    %120 = vector.broadcast %cst_33 : f32 to vector<1x128xf32>
    %121 = arith.addf %120, %119 : vector<1x128xf32>
    %122 = arith.divf %120, %121 : vector<1x128xf32>
    %123 = math.tanh %117 : vector<1x128xf32>
    %124 = vector.extract_strided_slice %122 {offsets = [0, 0], sizes = [1, 32], strides = [1, 1]} : vector<1x128xf32> to vector<1x32xf32>
    %125 = vector.extract_strided_slice %122 {offsets = [0, 32], sizes = [1, 32], strides = [1, 1]} : vector<1x128xf32> to vector<1x32xf32>
    %126 = vector.extract_strided_slice %123 {offsets = [0, 64], sizes = [1, 32], strides = [1, 1]} : vector<1x128xf32> to vector<1x32xf32>
    %127 = vector.extract_strided_slice %122 {offsets = [0, 96], sizes = [1, 32], strides = [1, 1]} : vector<1x128xf32> to vector<1x32xf32>
    %128 = arith.mulf %125, %110 : vector<1x32xf32>
    %129 = arith.mulf %124, %126 : vector<1x32xf32>
    %130 = arith.addf %128, %129 : vector<1x32xf32>
    %131 = math.tanh %130 : vector<1x32xf32>
    %132 = arith.mulf %127, %131 : vector<1x32xf32>
    %133 = vector.extract_strided_slice %30 {offsets = [5, 0], sizes = [1, 128], strides = [1, 1]} : vector<8x128xf32> to vector<1x128xf32>
    %134 = arith.truncf %132 : vector<1x32xf32> to vector<1x32xbf16>
    %c0_34 = arith.constant 0 : index
    %c0_35 = arith.constant 0 : index
    %135 = vector.load %arg3[%c0_34, %c0_35] : memref<32x128xbf16, #tpu.memory_space<vmem>>, vector<32x128xbf16>
    %cst_36 = arith.constant dense<0.000000e+00> : vector<1x128xf32>
    %136 = tpu.matmul %134, %135, %cst_36 {dimension_numbers = #tpu.dot_dimension_numbers<[1], [0], [0], [1], [0, 0, 1, 1], [], []>} : vector<1x32xbf16>, vector<32x128xbf16>, vector<1x128xf32> -> vector<1x128xf32>
    %137 = arith.addf %133, %136 : vector<1x128xf32>
    %138 = arith.negf %137 : vector<1x128xf32>
    %139 = math.exp %138 : vector<1x128xf32>
    %cst_37 = arith.constant 1.000000e+00 : f32
    %140 = vector.broadcast %cst_37 : f32 to vector<1x128xf32>
    %141 = arith.addf %140, %139 : vector<1x128xf32>
    %142 = arith.divf %140, %141 : vector<1x128xf32>
    %143 = math.tanh %137 : vector<1x128xf32>
    %144 = vector.extract_strided_slice %142 {offsets = [0, 0], sizes = [1, 32], strides = [1, 1]} : vector<1x128xf32> to vector<1x32xf32>
    %145 = vector.extract_strided_slice %142 {offsets = [0, 32], sizes = [1, 32], strides = [1, 1]} : vector<1x128xf32> to vector<1x32xf32>
    %146 = vector.extract_strided_slice %143 {offsets = [0, 64], sizes = [1, 32], strides = [1, 1]} : vector<1x128xf32> to vector<1x32xf32>
    %147 = vector.extract_strided_slice %142 {offsets = [0, 96], sizes = [1, 32], strides = [1, 1]} : vector<1x128xf32> to vector<1x32xf32>
    %148 = arith.mulf %145, %130 : vector<1x32xf32>
    %149 = arith.mulf %144, %146 : vector<1x32xf32>
    %150 = arith.addf %148, %149 : vector<1x32xf32>
    %151 = math.tanh %150 : vector<1x32xf32>
    %152 = arith.mulf %147, %151 : vector<1x32xf32>
    %153 = vector.extract_strided_slice %30 {offsets = [6, 0], sizes = [1, 128], strides = [1, 1]} : vector<8x128xf32> to vector<1x128xf32>
    %154 = arith.truncf %152 : vector<1x32xf32> to vector<1x32xbf16>
    %c0_38 = arith.constant 0 : index
    %c0_39 = arith.constant 0 : index
    %155 = vector.load %arg3[%c0_38, %c0_39] : memref<32x128xbf16, #tpu.memory_space<vmem>>, vector<32x128xbf16>
    %cst_40 = arith.constant dense<0.000000e+00> : vector<1x128xf32>
    %156 = tpu.matmul %154, %155, %cst_40 {dimension_numbers = #tpu.dot_dimension_numbers<[1], [0], [0], [1], [0, 0, 1, 1], [], []>} : vector<1x32xbf16>, vector<32x128xbf16>, vector<1x128xf32> -> vector<1x128xf32>
    %157 = arith.addf %153, %156 : vector<1x128xf32>
    %158 = arith.negf %157 : vector<1x128xf32>
    %159 = math.exp %158 : vector<1x128xf32>
    %cst_41 = arith.constant 1.000000e+00 : f32
    %160 = vector.broadcast %cst_41 : f32 to vector<1x128xf32>
    %161 = arith.addf %160, %159 : vector<1x128xf32>
    %162 = arith.divf %160, %161 : vector<1x128xf32>
    %163 = math.tanh %157 : vector<1x128xf32>
    %164 = vector.extract_strided_slice %162 {offsets = [0, 0], sizes = [1, 32], strides = [1, 1]} : vector<1x128xf32> to vector<1x32xf32>
    %165 = vector.extract_strided_slice %162 {offsets = [0, 32], sizes = [1, 32], strides = [1, 1]} : vector<1x128xf32> to vector<1x32xf32>
    %166 = vector.extract_strided_slice %163 {offsets = [0, 64], sizes = [1, 32], strides = [1, 1]} : vector<1x128xf32> to vector<1x32xf32>
    %167 = vector.extract_strided_slice %162 {offsets = [0, 96], sizes = [1, 32], strides = [1, 1]} : vector<1x128xf32> to vector<1x32xf32>
    %168 = arith.mulf %165, %150 : vector<1x32xf32>
    %169 = arith.mulf %164, %166 : vector<1x32xf32>
    %170 = arith.addf %168, %169 : vector<1x32xf32>
    %171 = math.tanh %170 : vector<1x32xf32>
    %172 = arith.mulf %167, %171 : vector<1x32xf32>
    %173 = vector.extract_strided_slice %30 {offsets = [7, 0], sizes = [1, 128], strides = [1, 1]} : vector<8x128xf32> to vector<1x128xf32>
    %174 = arith.truncf %172 : vector<1x32xf32> to vector<1x32xbf16>
    %c0_42 = arith.constant 0 : index
    %c0_43 = arith.constant 0 : index
    %175 = vector.load %arg3[%c0_42, %c0_43] : memref<32x128xbf16, #tpu.memory_space<vmem>>, vector<32x128xbf16>
    %cst_44 = arith.constant dense<0.000000e+00> : vector<1x128xf32>
    %176 = tpu.matmul %174, %175, %cst_44 {dimension_numbers = #tpu.dot_dimension_numbers<[1], [0], [0], [1], [0, 0, 1, 1], [], []>} : vector<1x32xbf16>, vector<32x128xbf16>, vector<1x128xf32> -> vector<1x128xf32>
    %177 = arith.addf %173, %176 : vector<1x128xf32>
    %178 = arith.negf %177 : vector<1x128xf32>
    %179 = math.exp %178 : vector<1x128xf32>
    %cst_45 = arith.constant 1.000000e+00 : f32
    %180 = vector.broadcast %cst_45 : f32 to vector<1x128xf32>
    %181 = arith.addf %180, %179 : vector<1x128xf32>
    %182 = arith.divf %180, %181 : vector<1x128xf32>
    %183 = math.tanh %177 : vector<1x128xf32>
    %184 = vector.extract_strided_slice %182 {offsets = [0, 0], sizes = [1, 32], strides = [1, 1]} : vector<1x128xf32> to vector<1x32xf32>
    %185 = vector.extract_strided_slice %182 {offsets = [0, 32], sizes = [1, 32], strides = [1, 1]} : vector<1x128xf32> to vector<1x32xf32>
    %186 = vector.extract_strided_slice %183 {offsets = [0, 64], sizes = [1, 32], strides = [1, 1]} : vector<1x128xf32> to vector<1x32xf32>
    %187 = vector.extract_strided_slice %182 {offsets = [0, 96], sizes = [1, 32], strides = [1, 1]} : vector<1x128xf32> to vector<1x32xf32>
    %188 = arith.mulf %185, %170 : vector<1x32xf32>
    %189 = arith.mulf %184, %186 : vector<1x32xf32>
    %190 = arith.addf %188, %189 : vector<1x32xf32>
    %191 = math.tanh %190 : vector<1x32xf32>
    %192 = arith.mulf %187, %191 : vector<1x32xf32>
    %193 = tpu.concatenate %52, %72, %92, %112, %132, %152, %172, %192 in 0 : vector<1x32xf32>, vector<1x32xf32>, vector<1x32xf32>, vector<1x32xf32>, vector<1x32xf32>, vector<1x32xf32>, vector<1x32xf32>, vector<1x32xf32> -> vector<8x32xf32>
    %194 = arith.truncf %193 : vector<8x32xf32> to vector<8x32xbf16>
    %c0_46 = arith.constant 0 : index
    %c0_47 = arith.constant 0 : index
    %195 = vector.load %arg5[%c0_46, %c0_47] : memref<32x128xbf16, #tpu.memory_space<vmem>>, vector<32x128xbf16>
    %cst_48 = arith.constant dense<0.000000e+00> : vector<8x128xf32>
    %196 = tpu.matmul %194, %195, %cst_48 {dimension_numbers = #tpu.dot_dimension_numbers<[1], [0], [0], [1], [0, 0, 1, 1], [], []>} : vector<8x32xbf16>, vector<32x128xbf16>, vector<8x128xf32> -> vector<8x128xf32>
    %c0_49 = arith.constant 0 : index
    %c0_50 = arith.constant 0 : index
    %197 = vector.load %arg6[%c0_49, %c0_50] : memref<1x128xf32, #tpu.memory_space<vmem>>, vector<1x128xf32>
    %198 = vector.broadcast %197 : vector<1x128xf32> to vector<8x128xf32>
    %199 = arith.addf %196, %198 : vector<8x128xf32>
    %cst_51 = arith.constant dense<0xFF800000> : vector<8xf32>
    %200 = vector.multi_reduction <maximumf>, %199, %cst_51 [1] : vector<8x128xf32> to vector<8xf32>
    %201 = vector.shape_cast %200 : vector<8xf32> to vector<8x1xf32>
    %202 = vector.broadcast %201 : vector<8x1xf32> to vector<8x128xf32>
    %203 = arith.subf %199, %202 : vector<8x128xf32>
    %204 = math.exp %203 : vector<8x128xf32>
    %cst_52 = arith.constant dense<0.000000e+00> : vector<8xf32>
    %205 = vector.multi_reduction <add>, %204, %cst_52 [1] : vector<8x128xf32> to vector<8xf32>
    %206 = vector.shape_cast %205 : vector<8xf32> to vector<8x1xf32>
    %207 = math.log %206 : vector<8x1xf32>
    %208 = vector.broadcast %207 : vector<8x1xf32> to vector<8x128xf32>
    %209 = arith.subf %203, %208 : vector<8x128xf32>
    %c0_53 = arith.constant 0 : index
    %c0_54 = arith.constant 0 : index
    %210 = vector.load %arg7[%c0_53, %c0_54] : memref<8x128xf32, #tpu.memory_space<vmem>>, vector<8x128xf32>
    tpu.vector_store %arg7[%c0_53, %c0_54], %209 {strides = array<i32>} : memref<8x128xf32, #tpu.memory_space<vmem>>, vector<8x128xf32>,
    return
  }
}

</mosaic_0001>

<bundles_post_ra>
// kernel: tpu_custom_call.1
= control target key start
LH: loop header
LB: loop body
LE: loop exit
PB: predicated region body
PF: predicated region fallthrough
CT: control target
= control target key end

     0   :  { %12 = vsyncpa [#allocation5], 0  ;;  %s1275_s0 = inlined_call_operand.hbm [shape: s32[8], index: 0, kind: input, shape index: {}]   ;;  %s1276_s1 = inlined_call_operand.hbm [shape: f32[16,32], index: 1, kind: input, shape index: {}]   ;;  %s1277_s2 = inlined_call_operand.hbm [shape: bf16[32,128], index: 2, kind: input, shape index: {}]   ;;  %s1278_s3 = inlined_call_operand.hbm [shape: bf16[32,128], index: 3, kind: input, shape index: {}]   ;;  %s1279_s4 = inlined_call_operand.vmem [shape: f32[1,128], index: 4, kind: input, shape index: {}]   ;;  %s1280_s5 = inlined_call_operand.hbm [shape: bf16[32,128], index: 5, kind: input, shape index: {}]   ;;  %s1281_s6 = inlined_call_operand.vmem [shape: f32[1,128], index: 6, kind: input, shape index: {}]   ;;  %s1282_s7 = inlined_call_operand.hbm [shape: f32[8,128], index: 7, kind: output, shape index: {}]  }
   0x1   :  { %13 = vsyncpa [#allocation3], 0 }
   0x2   :  { %14 = vsyncpa [#allocation8], 0 }
   0x3   :  { %15 = vsyncpa [#allocation11], 0  ;;  %s43_s26 = sshll.u32 %s1277_s2, 4  ;;  %s44_s26 = int_to_ptr.hbm [resolvable:$true] %s43_s26 }
   0x4   :  { %16 = vsyncpa [#allocation4], 0  ;;  %s1094_s27 = smov [#allocation7]   ;;  %s22_s8 = sshll.u32 %s1275_s0, 4  ;;  %s23_s8 = int_to_ptr.hbm [resolvable:$true] %s22_s8 }
   0x5   :  { %s45_s28 = sshll.u32 %s1094_s27, 4  ;;  %s1095_s9 = smov 64   ;;  %s46_s28 = int_to_ptr.vmem [resolvable:$true] %s45_s28 }
   0x6   :  { %s1096_s10 = smov 4   ;;  %s1097_s11 = smov [#allocation2]  }
   0x7   :  { %51 = dma.hbm_to_vmem [thread:$0]  %s44_s26, 256, %s46_s28, [#allocation8], %s1095_s9, %s1095_s9, %s1096_s10  }
   0x8   :  { %25 = dma.hbm_to_smem %s23_s8, 16, %s1097_s11, [#allocation5]  }
   0x9   :  { %s30_s2 = sshll.u32 %s1276_s1, 4  ;;  %s1098_s14 = smov [#allocation6]   ;;  %s31_s2 = int_to_ptr.hbm [resolvable:$true] %s30_s2 }
   0xa   :  { %s32_s15 = sshll.u32 %s1098_s14, 4  ;;  %s56_s0 = sshll.u32 %s1278_s3, 4  ;;  %s33_s15 = int_to_ptr.vmem [resolvable:$true] %s32_s15  ;;  %s57_s0 = int_to_ptr.hbm [resolvable:$true] %s56_s0 }
   0xb   :  { %s1099_s18 = smov 128   ;;  %s1100_s19 = smov 8  }
   0xc   :  { %38 = dma.hbm_to_vmem [thread:$0]  %s31_s2, 256, %s33_s15, [#allocation3], %s1099_s18, %s1099_s18, %s1100_s19  }
   0xd   :  { %s1101_s20 = smov [#allocation9]   ;;  %s71_s24 = sshll.u32 %s1280_s5, 4  ;;  %s72_s24 = int_to_ptr.hbm [resolvable:$true] %s71_s24 }
   0xe   :  { %s58_s21 = sshll.u32 %s1101_s20, 4  ;;  %s1102_s1 = smov [#allocation10]   ;;  %s59_s21 = int_to_ptr.vmem [resolvable:$true] %s58_s21 }
   0xf   :  { %64 = dma.hbm_to_vmem [thread:$0]  %s57_s0, 256, %s59_s21, [#allocation8], %s1095_s9, %s1095_s9, %s1096_s10  }
  0x10   :  { %s73_s25 = sshll.u32 %s1102_s1, 4  ;;  %s74_s25 = int_to_ptr.vmem [resolvable:$true] %s73_s25 }
  0x11   :  { %79 = dma.hbm_to_vmem [thread:$0]  %s72_s24, 256, %s74_s25, [#allocation11], %s1095_s9, %s1095_s9, %s1096_s10  }
  0x12   :  { %1084 = dma.done.wait [#allocation5], 16  }
  0x13   :  { %1085 = vsyncadd [#allocation5], 4294967280 }
  0x14   :  { %1086 = dma.done.wait [#allocation3], 256  }
  0x15   :  { %1087 = vsyncadd [#allocation3], 4294967040 }
  0x16   :  { %1088 = dma.done.wait [#allocation8], 512  }
  0x17   :  { %1089 = vsyncadd [#allocation8], 4294966784 }
  0x18   :  { %1090 = dma.done.wait [#allocation11], 256  }
  0x19   :  { %1091 = vsyncadd [#allocation11], 4294967040 }
  0x1a   :  { %102 = sfence }
  0x1b   :  { %v1167_v0 = vld [vmem:[#allocation9 + $0x8] sm:$0xff]  ;;  %v865_v1 = vld [vmem:[#allocation7 + $0x8] sm:$0xff]  ;;  %s104_s3 = sld [smem:[#allocation2]]  ;;  %v1170_v2 = vld [vmem:[#allocation9] sm:$0xff]  ;;  %vm149_vm0 = vcmask 1040384   ;;  %v1103_v6 = vmov 0  }
  0x1c   :  { %s816_s5 = sld [smem:[#allocation2 + $0x1]]  ;;  %226 = vmatpush.bf16.msra.mxu1 %v1167_v0  ;;  %194 = vmatpush.bf16.msra.mxu0 %v865_v1  ;;  %v864_v3 = vld [vmem:[#allocation7] sm:$0xff]  ;;  %vm151_vm1 = vcmask 1041408   ;;  %vm153_vm2 = vcmask 1042432   ;;  %vm155_vm3 = vcmask 1043456   ;;  %vm157_vm4 = vcmask 1044480  }
  0x1d   :  { %s817_s26 = sld [smem:[#allocation2 + $0x2]]  ;;  %284 = vmatpush.bf16.msra.mxu2 %v1167_v0  ;;  %350 = vmatpush.bf16.msra.mxu3 %v1167_v0  ;;  %vm159_vm5 = vcmask 1045504   ;;  %vm161_vm6 = vcmask 1046528   ;;  %vm184_vm7 = vcmask 261120   ;;  %v882_v29 = vld [vmem:[%s1279_s4] ss:$0 sm:$0xff] }
  0x1e   :  { %s818_s27 = sld [smem:[#allocation2 + $0x3]]  ;;  %s1104_s4 = smov 32  }
  0x1f   :  { %s819_s28 = sld [smem:[#allocation2 + $0x4]]  ;;  %s795_s23 = sshll.u32 %s1282_s7, 4  ;;  %s796_s23 = int_to_ptr.hbm [resolvable:$true] %s795_s23 }
  0x20   :  { %s1174_s29 = sld [smem:[#allocation2 + $0x5]]  ;;  %227 = vmatpush.bf16.msra.mxu1 %v1170_v2  ;;  %195 = vmatpush.bf16.msra.mxu0 %v864_v3 }
  0x21   :  { %s1177_s30 = sld [smem:[#allocation2 + $0x6]]  ;;  %285 = vmatpush.bf16.msra.mxu2 %v1170_v2  ;;  %351 = vmatpush.bf16.msra.mxu3 %v1170_v2  ;;  %s105_s10 = scalar_lea.vmem [#allocation6], %s104_s3 }
  0x22   :  { %s1179_s8 = sld [smem:[#allocation2 + $0x7]]  ;;  %v106_v4 = vld [vmem:[%s105_s10] sm:$0x1]  ;;  %s108_s11 = scalar_lea.vmem [#allocation6], %s816_s5 }
  0x23   :  { %v109_v5 = vld [vmem:[%s108_s11] sm:$0x1]  ;;  %228 = vmatmul.bf16.vlgmr.msra.gmra.mxu1 %v1103_v6  ;;  %s111_s12 = scalar_lea.vmem [#allocation6], %s817_s26 }
  0x24   :  { %415 = vmatpush.bf16.msrb.mxu0 %v1167_v0  ;;  %482 = vmatpush.bf16.msrb.mxu1 %v1167_v0  ;;  %v112_v7 = vld [vmem:[%s111_s12] sm:$0x1]  ;;  %v129_v8 = vrot.slane %v109_v5, 7  ;;  %s114_s13 = scalar_lea.vmem [#allocation6], %s818_s27 }
  0x25   :  { %547 = vmatpush.bf16.msrb.mxu2 %v1167_v0  ;;  %v115_v9 = vld [vmem:[%s114_s13] sm:$0x1]  ;;  %v132_v10 = vrot.slane %v112_v7, 6  ;;  %614 = vmatpush.bf16.msrb.mxu3 %v1167_v0  ;;  %s117_s2 = scalar_lea.vmem [#allocation6], %s819_s28 }
  0x26   :  { %v118_v11 = vld [vmem:[%s117_s2] sm:$0x1]  ;;  %v135_v12 = vrot.slane %v115_v9, 5  ;;  %v150_v13 = vsel %vm149_vm0, %v106_v4, %v129_v8  ;;  %s120_s14 = scalar_lea.vmem [#allocation6], %s1174_s29 }
  0x27   :  { %v121_v14 = vld [vmem:[%s120_s14] sm:$0x1]  ;;  %v138_v15 = vrot.slane %v118_v11, 4  ;;  %v152_v16 = vsel %vm151_vm1, %v150_v13, %v132_v10  ;;  %s123_s15 = scalar_lea.vmem [#allocation6], %s1177_s30 }
  0x28   :  { %416 = vmatpush.bf16.msrb.mxu0 %v1170_v2  ;;  %483 = vmatpush.bf16.msrb.mxu1 %v1170_v2  ;;  %v124_v17 = vld [vmem:[%s123_s15] sm:$0x1]  ;;  %v141_v18 = vrot.slane %v121_v14, 3  ;;  %v154_v19 = vsel %vm153_vm2, %v152_v16, %v135_v12  ;;  %s126_s16 = scalar_lea.vmem [#allocation6], %s1179_s8 }
  0x29   :  { %548 = vmatpush.bf16.msrb.mxu2 %v1170_v2  ;;  %v127_v20 = vld [vmem:[%s126_s16] sm:$0x1]  ;;  %v144_v21 = vrot.slane %v124_v17, 2  ;;  %v156_v22 = vsel %vm155_vm3, %v154_v19, %v138_v15  ;;  %615 = vmatpush.bf16.msrb.mxu3 %v1170_v2 }
  0x2a   :  { %v147_v23 = vrot.slane %v127_v20, 1  ;;  %v158_v24 = vsel %vm157_vm4, %v156_v22, %v141_v18 }
  0x2b   :  { %v160_v25 = vsel %vm159_vm5, %v158_v24, %v144_v21 }
  0x2c   :  { %v162_v26 = vsel %vm161_vm6, %v160_v25, %v147_v23 }
  0x2d   :  { %v163_v27 = vpack.c.bf16 %v162_v26, %v162_v26 }
  0x2f   :  { %831 = vmatmul.msk.bf16.vlgmr.msra.gmra.mxu0 %vm184_vm7, %v163_v27 }
  0x30   :  { %679 = vmatpush.bf16.msra.mxu0 %v1167_v0 }
  0x34   :  { %680 = vmatpush.bf16.msra.mxu0 %v1170_v2 }
  0xa0   :  { %v229_v28 = vpop.f32.mrf.mxu1 }
  0xa8   :  { %v231_v30 = vpop.f32.mrf.mxu1 }
  0xac   :  { %v197_v31 = vpop.f32.mrf.mxu0 }
  0xad   :  { %v1207_v32 = vadd.f32 %v882_v29, %v197_v31 }
  0xaf   :  { %v233_v33 = vadd.f32 %v229_v28, %v1207_v32 }
  0xb1   :  { %884 = vtanh.f32 %v233_v33  ;;  %v840_v36 = vmul.f32 -1.442695, %v233_v33 }
  0xb3   :  { %886 = vpow2.f32 %v840_v36 }
  0xb4   :  { %v199_v34 = vpop.f32.mrf.mxu0 }
  0xb7   :  { %v885_v35 = vpop.eup %884 }
  0xb8   :  { %256 = vrot.lane.b32.xlu0 %v885_v35, %s1095_s9 }
  0xb9   :  { %v887_v37 = vpop.eup %886 }
  0xba   :  { %v237_v38 = vadd.f32 1.0, %v887_v37 }
  0xbc   :  { %888 = vrcp.f32 %v237_v38  ;;  %v249_v44 = vand.u32 2147483648, %v237_v38  ;;  %vm243_vm9 = vweird.f32 %v237_v38  ;;  %v247_v45 = vand.u32 2147483647, %v237_v38 }
  0xbe   :  { %v250_v47 = vor.u32 1.1754944e-38, %v249_v44  ;;  %vm248_vm11 = vcmp.eq.f32.partialorder %v247_v45, 8.507059e+37 }
  0xc2   :  { %v889_v39 = vpop.eup %888 }
  0xc3   :  { %v239_v40 = vmul.f32 %v889_v39, %v237_v38  ;;  %vm244_vm8 = vweird.f32 %v889_v39 }
  0xc4   :  { %vm245_vm10 = vmor %vm243_vm9, %vm244_vm8 }
  0xc5   :  { %v240_v41 = vsub.f32 1.0, %v239_v40 }
  0xc7   :  { %v241_v42 = vmul.f32 %v889_v39, %v240_v41 }
  0xc9   :  { %v242_v43 = vadd.f32 %v889_v39, %v241_v42 }
  0xcb   :  { %v246_v46 = vsel %vm245_vm10, %v889_v39, %v242_v43 }
  0xcc   :  { %v251_v49 = vsel %vm248_vm11, %v250_v47, %v246_v46 }
  0xcd   :  { %v254_v51 = vmul.f32 0.0, %v251_v49 }
 0x12a   :  { %v257_v48 = vpop.permute.xlu0 %256 }
 0x12b   :  { %v259_v50 = vmul.f32 %v257_v48, %v251_v49 }
 0x12d   :  { %261 = vrot.lane.b32.xlu0 %v259_v50, %s1104_s4 }
 0x19f   :  { %v262_v52 = vpop.permute.xlu0 %261 }
 0x1a0   :  { %v264_v53 = vadd.f32 %v262_v52, %v254_v51 }
 0x1a2   :  { %890 = vtanh.f32 %v264_v53  ;;  %v316_v15 = vrot.slane %v264_v53, 7 }
 0x1a8   :  { %v891_v54 = vpop.eup %890 }
 0x1a9   :  { %267 = vrot.lane.b32.xlu1 %v891_v54, %s1095_s9 }
 0x21b   :  { %v268_v55 = vpop.permute.xlu1 %267 }
 0x21c   :  { %v1213_v56 = vmul.f32 %v268_v55, %v251_v49 }
 0x21e   :  { %v271_v57 = vpack.c.bf16 %v1213_v56, %v1213_v56 }
 0x220   :  { %273 = vrot.lane.b32.xlu1 %v271_v57, %s1104_s4 }
 0x292   :  { %v274_v58 = vpop.permute.xlu1 %273 }
 0x293   :  { %841 = vmatmul.msk.bf16.vlgmr.msra.gmra.mxu2 %vm184_vm7, %v274_v58 }
 0x316   :  { %v287_v59 = vpop.f32.mrf.mxu2 }
 0x317   :  { %v292_v60 = vrot.slane %v287_v59, 7 }
 0x319   :  { %v294_v61 = vadd.f32 %v292_v60, %v1207_v32 }
 0x31b   :  { %892 = vtanh.f32 %v294_v61  ;;  %v842_v0 = vmul.f32 -1.442695, %v294_v61 }
 0x31d   :  { %894 = vpow2.f32 %v842_v0 }
 0x31e   :  { %v289_v62 = vpop.f32.mrf.mxu2 }
 0x321   :  { %v893_v63 = vpop.eup %892 }
 0x322   :  { %320 = vrot.lane.b32.xlu2 %v893_v63, %s1095_s9 }
 0x323   :  { %v895_v1 = vpop.eup %894 }
 0x324   :  { %v298_v2 = vadd.f32 1.0, %v895_v1 }
 0x326   :  { %896 = vrcp.f32 %v298_v2  ;;  %v310_v8 = vand.u32 2147483648, %v298_v2  ;;  %vm304_vm13 = vweird.f32 %v298_v2  ;;  %v308_v9 = vand.u32 2147483647, %v298_v2 }
 0x328   :  { %v311_v11 = vor.u32 1.1754944e-38, %v310_v8  ;;  %vm309_vm15 = vcmp.eq.f32.partialorder %v308_v9, 8.507059e+37 }
 0x32c   :  { %v897_v3 = vpop.eup %896 }
 0x32d   :  { %v300_v4 = vmul.f32 %v897_v3, %v298_v2  ;;  %vm305_vm12 = vweird.f32 %v897_v3 }
 0x32e   :  { %vm306_vm14 = vmor %vm304_vm13, %vm305_vm12 }
 0x32f   :  { %v301_v5 = vsub.f32 1.0, %v300_v4 }
 0x331   :  { %v302_v6 = vmul.f32 %v897_v3, %v301_v5 }
 0x333   :  { %v303_v7 = vadd.f32 %v897_v3, %v302_v6 }
 0x335   :  { %v307_v10 = vsel %vm306_vm14, %v897_v3, %v303_v7 }
 0x336   :  { %v312_v13 = vsel %vm309_vm15, %v311_v11, %v307_v10 }
 0x337   :  { %v318_v16 = vmul.f32 %v316_v15, %v312_v13 }
 0x37c   :  { %v321_v12 = vpop.permute.xlu2 %320 }
 0x37d   :  { %v323_v14 = vmul.f32 %v321_v12, %v312_v13 }
 0x37f   :  { %325 = vrot.lane.b32.xlu2 %v323_v14, %s1104_s4 }
 0x3d9   :  { %v326_v17 = vpop.permute.xlu2 %325 }
 0x3da   :  { %v328_v18 = vadd.f32 %v326_v17, %v318_v16 }
 0x3dc   :  { %898 = vtanh.f32 %v328_v18  ;;  %v382_v46 = vrot.slane %v328_v18, 7 }
 0x3e2   :  { %v899_v19 = vpop.eup %898 }
 0x3e3   :  { %331 = vrot.lane.b32.xlu0 %v899_v19, %s1095_s9 }
 0x455   :  { %v332_v20 = vpop.permute.xlu0 %331 }
 0x456   :  { %v334_v21 = vmul.f32 %v332_v20, %v312_v13 }
 0x458   :  { %v335_v22 = vpack.c.bf16 %v334_v21, %v334_v21  ;;  %v730_v53 = vsel %vm149_vm0, %v1213_v56, %v334_v21 }
 0x45a   :  { %v337_v23 = vshrl.u32 %v335_v22, 16 }
 0x45c   :  { %339 = vrot.lane.b32.xlu1 %v337_v23, %s1104_s4 }
 0x4ce   :  { %v340_v24 = vpop.permute.xlu1 %339 }
 0x4cf   :  { %843 = vmatmul.msk.bf16.vlgmr.msra.gmra.mxu3 %vm184_vm7, %v340_v24 }
 0x552   :  { %v353_v25 = vpop.f32.mrf.mxu3 }
 0x553   :  { %v358_v26 = vrot.slane %v353_v25, 6 }
 0x555   :  { %v360_v27 = vadd.f32 %v358_v26, %v1207_v32 }
 0x557   :  { %900 = vtanh.f32 %v360_v27  ;;  %v844_v30 = vmul.f32 -1.442695, %v360_v27 }
 0x559   :  { %902 = vpow2.f32 %v844_v30 }
 0x55a   :  { %v355_v28 = vpop.f32.mrf.mxu3 }
 0x55d   :  { %v901_v29 = vpop.eup %900 }
 0x55e   :  { %386 = vrot.lane.b32.xlu2 %v901_v29, %s1095_s9 }
 0x55f   :  { %v903_v31 = vpop.eup %902 }
 0x560   :  { %v364_v33 = vadd.f32 1.0, %v903_v31 }
 0x562   :  { %904 = vrcp.f32 %v364_v33  ;;  %v376_v39 = vand.u32 2147483648, %v364_v33  ;;  %vm370_vm9 = vweird.f32 %v364_v33  ;;  %v374_v40 = vand.u32 2147483647, %v364_v33 }
 0x564   :  { %v377_v42 = vor.u32 1.1754944e-38, %v376_v39  ;;  %vm375_vm11 = vcmp.eq.f32.partialorder %v374_v40, 8.507059e+37 }
 0x568   :  { %v905_v34 = vpop.eup %904 }
 0x569   :  { %v366_v35 = vmul.f32 %v905_v34, %v364_v33  ;;  %vm371_vm8 = vweird.f32 %v905_v34 }
 0x56a   :  { %vm372_vm10 = vmor %vm370_vm9, %vm371_vm8 }
 0x56b   :  { %v367_v36 = vsub.f32 1.0, %v366_v35 }
 0x56d   :  { %v368_v37 = vmul.f32 %v905_v34, %v367_v36 }
 0x56f   :  { %v369_v38 = vadd.f32 %v905_v34, %v368_v37 }
 0x571   :  { %v373_v41 = vsel %vm372_vm10, %v905_v34, %v369_v38 }
 0x572   :  { %v378_v44 = vsel %vm375_vm11, %v377_v42, %v373_v41 }
 0x573   :  { %v384_v47 = vmul.f32 %v382_v46, %v378_v44 }
 0x5b8   :  { %v387_v43 = vpop.permute.xlu2 %386 }
 0x5b9   :  { %v389_v45 = vmul.f32 %v387_v43, %v378_v44 }
 0x5bb   :  { %391 = vrot.lane.b32.xlu0 %v389_v45, %s1104_s4 }
 0x62d   :  { %v392_v48 = vpop.permute.xlu0 %391 }
 0x62e   :  { %v394_v49 = vadd.f32 %v392_v48, %v384_v47 }
 0x630   :  { %906 = vtanh.f32 %v394_v49  ;;  %v447_v14 = vrot.slane %v394_v49, 7 }
 0x636   :  { %v907_v50 = vpop.eup %906 }
 0x637   :  { %397 = vrot.lane.b32.xlu1 %v907_v50, %s1095_s9 }
 0x6a9   :  { %v398_v51 = vpop.permute.xlu1 %397 }
 0x6aa   :  { %v400_v52 = vmul.f32 %v398_v51, %v378_v44 }
 0x6ac   :  { %v401_v54 = vpack.c.bf16 %v400_v52, %v400_v52  ;;  %v731_v55 = vsel %vm151_vm1, %v730_v53, %v400_v52 }
 0x6ae   :  { %v403_v57 = vrot.slane %v401_v54, 1 }
 0x6b0   :  { %404 = vrot.lane.b32.xlu2 %v403_v57, %s1104_s4 }
 0x70a   :  { %v405_v58 = vpop.permute.xlu2 %404 }
 0x70b   :  { %845 = vmatmul.msk.bf16.vlgmr.msrb.gmra.mxu0 %vm184_vm7, %v405_v58 }
 0x788   :  { %v418_v59 = vpop.f32.mrf.mxu0 }
 0x789   :  { %v423_v60 = vrot.slane %v418_v59, 5 }
 0x78b   :  { %v425_v61 = vadd.f32 %v423_v60, %v1207_v32 }
 0x78d   :  { %908 = vtanh.f32 %v425_v61  ;;  %v846_v0 = vmul.f32 -1.442695, %v425_v61 }
 0x78f   :  { %910 = vpow2.f32 %v846_v0 }
 0x790   :  { %v420_v62 = vpop.f32.mrf.mxu0 }
 0x793   :  { %v909_v63 = vpop.eup %908 }
 0x794   :  { %451 = vrot.lane.b32.xlu0 %v909_v63, %s1095_s9 }
 0x795   :  { %v911_v56 = vpop.eup %910 }
 0x796   :  { %v429_v1 = vadd.f32 1.0, %v911_v56 }
 0x798   :  { %912 = vrcp.f32 %v429_v1  ;;  %v441_v7 = vand.u32 2147483648, %v429_v1  ;;  %vm435_vm1 = vweird.f32 %v429_v1  ;;  %v439_v8 = vand.u32 2147483647, %v429_v1 }
 0x79a   :  { %v442_v10 = vor.u32 1.1754944e-38, %v441_v7  ;;  %vm440_vm13 = vcmp.eq.f32.partialorder %v439_v8, 8.507059e+37 }
 0x79e   :  { %v913_v2 = vpop.eup %912 }
 0x79f   :  { %v431_v3 = vmul.f32 %v913_v2, %v429_v1  ;;  %vm436_vm0 = vweird.f32 %v913_v2 }
 0x7a0   :  { %vm437_vm12 = vmor %vm435_vm1, %vm436_vm0 }
 0x7a1   :  { %v432_v4 = vsub.f32 1.0, %v431_v3 }
 0x7a3   :  { %v433_v5 = vmul.f32 %v913_v2, %v432_v4 }
 0x7a5   :  { %v434_v6 = vadd.f32 %v913_v2, %v433_v5 }
 0x7a7   :  { %v438_v9 = vsel %vm437_vm12, %v913_v2, %v434_v6 }
 0x7a8   :  { %v443_v12 = vsel %vm440_vm13, %v442_v10, %v438_v9 }
 0x7a9   :  { %v449_v15 = vmul.f32 %v447_v14, %v443_v12 }
 0x806   :  { %v452_v11 = vpop.permute.xlu0 %451 }
 0x807   :  { %v454_v13 = vmul.f32 %v452_v11, %v443_v12 }
 0x809   :  { %456 = vrot.lane.b32.xlu1 %v454_v13, %s1104_s4 }
 0x87b   :  { %v457_v16 = vpop.permute.xlu1 %456 }
 0x87c   :  { %v459_v17 = vadd.f32 %v457_v16, %v449_v15 }
 0x87e   :  { %914 = vtanh.f32 %v459_v17  ;;  %v514_v47 = vrot.slane %v459_v17, 7 }
 0x884   :  { %v915_v18 = vpop.eup %914 }
 0x885   :  { %462 = vrot.lane.b32.xlu2 %v915_v18, %s1095_s9 }
 0x8df   :  { %v463_v19 = vpop.permute.xlu2 %462 }
 0x8e0   :  { %v465_v20 = vmul.f32 %v463_v19, %v443_v12 }
 0x8e2   :  { %v466_v21 = vpack.c.bf16 %v465_v20, %v465_v20  ;;  %v732_v22 = vsel %vm153_vm2, %v731_v55, %v465_v20 }
 0x8e4   :  { %v468_v23 = vshrl.u32 %v466_v21, 16 }
 0x8e6   :  { %v470_v24 = vrot.slane %v468_v23, 1 }
 0x8e8   :  { %471 = vrot.lane.b32.xlu0 %v470_v24, %s1104_s4 }
 0x95a   :  { %v472_v25 = vpop.permute.xlu0 %471 }
 0x95b   :  { %847 = vmatmul.msk.bf16.vlgmr.msrb.gmra.mxu1 %vm184_vm7, %v472_v25 }
 0x9d8   :  { %v485_v26 = vpop.f32.mrf.mxu1 }
 0x9d9   :  { %v490_v27 = vrot.slane %v485_v26, 4 }
 0x9db   :  { %v492_v28 = vadd.f32 %v490_v27, %v1207_v32 }
 0x9dd   :  { %916 = vtanh.f32 %v492_v28  ;;  %v848_v31 = vmul.f32 -1.442695, %v492_v28 }
 0x9df   :  { %918 = vpow2.f32 %v848_v31 }
 0x9e0   :  { %v487_v29 = vpop.f32.mrf.mxu1 }
 0x9e3   :  { %v917_v30 = vpop.eup %916 }
 0x9e4   :  { %518 = vrot.lane.b32.xlu1 %v917_v30, %s1095_s9 }
 0x9e5   :  { %v919_v33 = vpop.eup %918 }
 0x9e6   :  { %v496_v34 = vadd.f32 1.0, %v919_v33 }
 0x9e8   :  { %920 = vrcp.f32 %v496_v34  ;;  %v508_v40 = vand.u32 2147483648, %v496_v34  ;;  %vm502_vm14 = vweird.f32 %v496_v34  ;;  %v506_v41 = vand.u32 2147483647, %v496_v34 }
 0x9ea   :  { %v509_v43 = vor.u32 1.1754944e-38, %v508_v40  ;;  %vm507_vm8 = vcmp.eq.f32.partialorder %v506_v41, 8.507059e+37 }
 0x9ee   :  { %v921_v35 = vpop.eup %920 }
 0x9ef   :  { %v498_v36 = vmul.f32 %v921_v35, %v496_v34  ;;  %vm503_vm2 = vweird.f32 %v921_v35 }
 0x9f0   :  { %vm504_vm15 = vmor %vm502_vm14, %vm503_vm2 }
 0x9f1   :  { %v499_v37 = vsub.f32 1.0, %v498_v36 }
 0x9f3   :  { %v500_v38 = vmul.f32 %v921_v35, %v499_v37 }
 0x9f5   :  { %v501_v39 = vadd.f32 %v921_v35, %v500_v38 }
 0x9f7   :  { %v505_v42 = vsel %vm504_vm15, %v921_v35, %v501_v39 }
 0x9f8   :  { %v510_v45 = vsel %vm507_vm8, %v509_v43, %v505_v42 }
 0x9f9   :  { %v516_v48 = vmul.f32 %v514_v47, %v510_v45 }
 0xa56   :  { %v519_v44 = vpop.permute.xlu1 %518 }
 0xa57   :  { %v521_v46 = vmul.f32 %v519_v44, %v510_v45 }
 0xa59   :  { %523 = vrot.lane.b32.xlu2 %v521_v46, %s1104_s4 }
 0xab3   :  { %v524_v49 = vpop.permute.xlu2 %523 }
 0xab4   :  { %v526_v50 = vadd.f32 %v524_v49, %v516_v48 }
 0xab6   :  { %922 = vtanh.f32 %v526_v50  ;;  %v579_v14 = vrot.slane %v526_v50, 7 }
 0xabc   :  { %v923_v51 = vpop.eup %922 }
 0xabd   :  { %529 = vrot.lane.b32.xlu0 %v923_v51, %s1095_s9 }
 0xb2f   :  { %v530_v52 = vpop.permute.xlu0 %529 }
 0xb30   :  { %v532_v53 = vmul.f32 %v530_v52, %v510_v45 }
 0xb32   :  { %v533_v54 = vpack.c.bf16 %v532_v53, %v532_v53  ;;  %v733_v55 = vsel %vm155_vm3, %v732_v22, %v532_v53 }
 0xb34   :  { %v535_v57 = vrot.slane %v533_v54, 2 }
 0xb36   :  { %536 = vrot.lane.b32.xlu1 %v535_v57, %s1104_s4 }
 0xba8   :  { %v537_v58 = vpop.permute.xlu1 %536 }
 0xba9   :  { %849 = vmatmul.msk.bf16.vlgmr.msrb.gmra.mxu2 %vm184_vm7, %v537_v58 }
 0xc2c   :  { %v550_v59 = vpop.f32.mrf.mxu2 }
 0xc2d   :  { %v555_v60 = vrot.slane %v550_v59, 3 }
 0xc2f   :  { %v557_v61 = vadd.f32 %v555_v60, %v1207_v32 }
 0xc31   :  { %924 = vtanh.f32 %v557_v61  ;;  %v850_v0 = vmul.f32 -1.442695, %v557_v61 }
 0xc33   :  { %926 = vpow2.f32 %v850_v0 }
 0xc34   :  { %v552_v62 = vpop.f32.mrf.mxu2 }
 0xc37   :  { %v925_v63 = vpop.eup %924 }
 0xc38   :  { %583 = vrot.lane.b32.xlu2 %v925_v63, %s1095_s9 }
 0xc39   :  { %v927_v56 = vpop.eup %926 }
 0xc3a   :  { %v561_v1 = vadd.f32 1.0, %v927_v56 }
 0xc3c   :  { %928 = vrcp.f32 %v561_v1  ;;  %v573_v7 = vand.u32 2147483648, %v561_v1  ;;  %vm567_vm9 = vweird.f32 %v561_v1  ;;  %v571_v8 = vand.u32 2147483647, %v561_v1 }
 0xc3e   :  { %v574_v10 = vor.u32 1.1754944e-38, %v573_v7  ;;  %vm572_vm11 = vcmp.eq.f32.partialorder %v571_v8, 8.507059e+37 }
 0xc42   :  { %v929_v2 = vpop.eup %928 }
 0xc43   :  { %v563_v3 = vmul.f32 %v929_v2, %v561_v1  ;;  %vm568_vm3 = vweird.f32 %v929_v2 }
 0xc44   :  { %vm569_vm10 = vmor %vm567_vm9, %vm568_vm3 }
 0xc45   :  { %v564_v4 = vsub.f32 1.0, %v563_v3 }
 0xc47   :  { %v565_v5 = vmul.f32 %v929_v2, %v564_v4 }
 0xc49   :  { %v566_v6 = vadd.f32 %v929_v2, %v565_v5 }
 0xc4b   :  { %v570_v9 = vsel %vm569_vm10, %v929_v2, %v566_v6 }
 0xc4c   :  { %v575_v12 = vsel %vm572_vm11, %v574_v10, %v570_v9 }
 0xc4d   :  { %v581_v15 = vmul.f32 %v579_v14, %v575_v12 }
 0xc92   :  { %v584_v11 = vpop.permute.xlu2 %583 }
 0xc93   :  { %v586_v13 = vmul.f32 %v584_v11, %v575_v12 }
 0xc95   :  { %588 = vrot.lane.b32.xlu0 %v586_v13, %s1104_s4 }
 0xd07   :  { %v589_v16 = vpop.permute.xlu0 %588 }
 0xd08   :  { %v591_v17 = vadd.f32 %v589_v16, %v581_v15 }
 0xd0a   :  { %930 = vtanh.f32 %v591_v17  ;;  %v646_v47 = vrot.slane %v591_v17, 7 }
 0xd10   :  { %v931_v18 = vpop.eup %930 }
 0xd11   :  { %594 = vrot.lane.b32.xlu1 %v931_v18, %s1095_s9  ;;  %v869_v18 = vld [vmem:[#allocation10 + $0x8] sm:$0xff] }
 0xd12   :  { %770 = vmatpush.bf16.msra.mxu1 %v869_v18 }
 0xd83   :  { %v595_v19 = vpop.permute.xlu1 %594 }
 0xd84   :  { %v597_v20 = vmul.f32 %v595_v19, %v575_v12  ;;  %v868_v19 = vld [vmem:[#allocation10] sm:$0xff] }
 0xd85   :  { %771 = vmatpush.bf16.msra.mxu1 %v868_v19 }
 0xd86   :  { %v598_v21 = vpack.c.bf16 %v597_v20, %v597_v20  ;;  %v734_v22 = vsel %vm157_vm4, %v733_v55, %v597_v20 }
 0xd88   :  { %v600_v23 = vshrl.u32 %v598_v21, 16 }
 0xd8a   :  { %v602_v24 = vrot.slane %v600_v23, 2 }
 0xd8c   :  { %603 = vrot.lane.b32.xlu2 %v602_v24, %s1104_s4 }
 0xde6   :  { %v604_v25 = vpop.permute.xlu2 %603 }
 0xde7   :  { %851 = vmatmul.msk.bf16.vlgmr.msrb.gmra.mxu3 %vm184_vm7, %v604_v25  ;;  %v883_v25 = vld [vmem:[%s1281_s6] ss:$0 sm:$0xff] }
 0xe6a   :  { %v617_v26 = vpop.f32.mrf.mxu3 }
 0xe6b   :  { %v622_v27 = vrot.slane %v617_v26, 2 }
 0xe6d   :  { %v624_v28 = vadd.f32 %v622_v27, %v1207_v32 }
 0xe6f   :  { %932 = vtanh.f32 %v624_v28  ;;  %v852_v31 = vmul.f32 -1.442695, %v624_v28 }
 0xe71   :  { %934 = vpow2.f32 %v852_v31 }
 0xe72   :  { %v619_v29 = vpop.f32.mrf.mxu3 }
 0xe75   :  { %v933_v30 = vpop.eup %932 }
 0xe76   :  { %650 = vrot.lane.b32.xlu0 %v933_v30, %s1095_s9 }
 0xe77   :  { %v935_v33 = vpop.eup %934 }
 0xe78   :  { %v628_v34 = vadd.f32 1.0, %v935_v33 }
 0xe7a   :  { %936 = vrcp.f32 %v628_v34  ;;  %v640_v40 = vand.u32 2147483648, %v628_v34  ;;  %vm634_vm0 = vweird.f32 %v628_v34  ;;  %v638_v41 = vand.u32 2147483647, %v628_v34 }
 0xe7c   :  { %v641_v43 = vor.u32 1.1754944e-38, %v640_v40  ;;  %vm639_vm12 = vcmp.eq.f32.partialorder %v638_v41, 8.507059e+37 }
 0xe80   :  { %v937_v35 = vpop.eup %936 }
 0xe81   :  { %v630_v36 = vmul.f32 %v937_v35, %v628_v34  ;;  %vm635_vm4 = vweird.f32 %v937_v35 }
 0xe82   :  { %vm636_vm1 = vmor %vm634_vm0, %vm635_vm4 }
 0xe83   :  { %v631_v37 = vsub.f32 1.0, %v630_v36 }
 0xe85   :  { %v632_v38 = vmul.f32 %v937_v35, %v631_v37 }
 0xe87   :  { %v633_v39 = vadd.f32 %v937_v35, %v632_v38 }
 0xe89   :  { %v637_v42 = vsel %vm636_vm1, %v937_v35, %v633_v39 }
 0xe8a   :  { %v642_v45 = vsel %vm639_vm12, %v641_v43, %v637_v42 }
 0xe8b   :  { %v648_v48 = vmul.f32 %v646_v47, %v642_v45 }
 0xee8   :  { %v651_v44 = vpop.permute.xlu0 %650 }
 0xee9   :  { %v653_v46 = vmul.f32 %v651_v44, %v642_v45 }
 0xeeb   :  { %655 = vrot.lane.b32.xlu1 %v653_v46, %s1104_s4 }
 0xf5d   :  { %v656_v49 = vpop.permute.xlu1 %655 }
 0xf5e   :  { %v658_v50 = vadd.f32 %v656_v49, %v648_v48 }
 0xf60   :  { %938 = vtanh.f32 %v658_v50  ;;  %v711_v13 = vrot.slane %v658_v50, 7 }
 0xf66   :  { %v939_v51 = vpop.eup %938 }
 0xf67   :  { %661 = vrot.lane.b32.xlu2 %v939_v51, %s1095_s9 }
 0xfc1   :  { %v662_v52 = vpop.permute.xlu2 %661 }
 0xfc2   :  { %v664_v53 = vmul.f32 %v662_v52, %v642_v45 }
 0xfc4   :  { %v665_v54 = vpack.c.bf16 %v664_v53, %v664_v53  ;;  %v735_v55 = vsel %vm159_vm5, %v734_v22, %v664_v53 }
 0xfc6   :  { %v667_v57 = vrot.slane %v665_v54, 3 }
 0xfc8   :  { %668 = vrot.lane.b32.xlu0 %v667_v57, %s1104_s4 }
0x103a   :  { %v669_v58 = vpop.permute.xlu0 %668 }
0x103b   :  { %853 = vmatmul.msk.bf16.vlgmr.msra.gmra.mxu0 %vm184_vm7, %v669_v58 }
0x10b8   :  { %v682_v59 = vpop.f32.mrf.mxu0 }
0x10b9   :  { %v687_v60 = vrot.slane %v682_v59, 1 }
0x10bb   :  { %v689_v61 = vadd.f32 %v687_v60, %v1207_v32 }
0x10bd   :  { %940 = vtanh.f32 %v689_v61  ;;  %v854_v0 = vmul.f32 -1.442695, %v689_v61 }
0x10bf   :  { %942 = vpow2.f32 %v854_v0 }
0x10c0   :  { %v684_v62 = vpop.f32.mrf.mxu0 }
0x10c3   :  { %v941_v63 = vpop.eup %940 }
0x10c4   :  { %715 = vrot.lane.b32.xlu1 %v941_v63, %s1095_s9 }
0x10c5   :  { %v943_v56 = vpop.eup %942 }
0x10c6   :  { %v693_v1 = vadd.f32 1.0, %v943_v56 }
0x10c8   :  { %944 = vrcp.f32 %v693_v1  ;;  %v705_v7 = vand.u32 2147483648, %v693_v1  ;;  %vm699_vm13 = vweird.f32 %v693_v1  ;;  %v703_v8 = vand.u32 2147483647, %v693_v1 }
0x10ca   :  { %v706_v9 = vor.u32 1.1754944e-38, %v705_v7  ;;  %vm704_vm14 = vcmp.eq.f32.partialorder %v703_v8, 8.507059e+37 }
0x10ce   :  { %v945_v2 = vpop.eup %944 }
0x10cf   :  { %v695_v3 = vmul.f32 %v945_v2, %v693_v1  ;;  %vm700_vm5 = vweird.f32 %v945_v2 }
0x10d0   :  { %vm701_vm2 = vmor %vm699_vm13, %vm700_vm5 }
0x10d1   :  { %v696_v4 = vsub.f32 1.0, %v695_v3 }
0x10d3   :  { %v697_v5 = vmul.f32 %v945_v2, %v696_v4 }
0x10d5   :  { %v698_v6 = vadd.f32 %v945_v2, %v697_v5 }
0x10d7   :  { %v702_v32 = vsel %vm701_vm2, %v945_v2, %v698_v6 }
0x10d8   :  { %v707_v11 = vsel %vm704_vm14, %v706_v9, %v702_v32 }
0x10d9   :  { %v713_v14 = vmul.f32 %v711_v13, %v707_v11 }
0x1136   :  { %v716_v10 = vpop.permute.xlu1 %715 }
0x1137   :  { %v718_v12 = vmul.f32 %v716_v10, %v707_v11 }
0x1139   :  { %720 = vrot.lane.b32.xlu2 %v718_v12, %s1104_s4 }
0x1193   :  { %v721_v15 = vpop.permute.xlu2 %720 }
0x1194   :  { %v723_v16 = vadd.f32 %v721_v15, %v713_v14 }
0x1196   :  { %946 = vtanh.f32 %v723_v16 }
0x119c   :  { %v947_v17 = vpop.eup %946 }
0x119d   :  { %726 = vrot.lane.b32.xlu0 %v947_v17, %s1095_s9  ;;  %s1105_s9 = smov [#allocation12]  }
0x119e   :  { %s793_s20 = sshll.u32 %s1105_s9, 4  ;;  %s794_s20 = int_to_ptr.vmem [resolvable:$true] %s793_s20 }
0x120f   :  { %v727_v20 = vpop.permute.xlu0 %726 }
0x1210   :  { %v729_v21 = vmul.f32 %v727_v20, %v707_v11 }
0x1212   :  { %v736_v22 = vsel %vm161_vm6, %v735_v55, %v729_v21 }
0x1213   :  { %v737_v23 = vpack.c.bf16 %v736_v22, %v736_v22 }
0x1215   :  { %747 = vrot.lane.b32.xlu1 %v737_v23, %s1104_s4 }
0x1287   :  { %v748_v24 = vpop.permute.xlu1 %747 }
0x1288   :  { %863 = vmatmul.msk.bf16.vlgmr.msra.gmra.mxu1 %vm184_vm7, %v748_v24 }
0x1305   :  { %v773_v26 = vpop.f32.mrf.mxu1 }
0x1306   :  { %v774_v27 = vadd.f32 %v883_v25, %v773_v26 }
0x1308   :  { %777 = vmax.xlane.f32.xlu2 %v774_v27 }
0x130d   :  { %v775_v28 = vpop.f32.mrf.mxu1 }
0x137b   :  { %v778_v29 = vpop.xlane.xlu2 %777 }
0x137c   :  { %v779_v30 = vsub.f32 %v774_v27, %v778_v29 }
0x137e   :  { %v780_v31 = vmul.f32 1.442695, %v779_v30 }
0x1380   :  { %948 = vpow2.f32 %v780_v31 }
0x1386   :  { %v949_v33 = vpop.eup %948 }
0x1387   :  { %782 = vadd.xlane.f32.xlu0 %v949_v33 }
0x13fa   :  { %v783_v34 = vpop.xlane.xlu0 %782 }
0x13fb   :  { %950 = vlog2.f32 %v783_v34 }
0x1401   :  { %v951_v35 = vpop.eup %950 }
0x1402   :  { %v785_v36 = vmul.f32 0.6931472, %v951_v35 }
0x1404   :  { %v786_v37 = vsub.f32 %v779_v30, %v785_v36 }
0x1406   :  { %787 = vst [vmem:[#allocation12] sm:$0xff] %v786_v37 }
0x1407   :  { %798 = dma.vmem_to_hbm [thread:$0]  %s794_s20, 128, %s796_s23, [#allocation4]  }
0x1408   :  { %1092 = dma.done.wait [#allocation4], 128  }
0x1409   :  { %1093 = vsyncadd [#allocation4], 4294967168 }
0x140a   :  { %803 = vsyncpa [#allocation3], 1 }
0x140b   :  { %804 = vsyncpa [#allocation8], 1 }
0x140c   :  { %805 = vsyncpa [#allocation11], 1 }
0x140d   :  { %806 = vsyncpa [#allocation4], 1 }
0x140e   :  { %807 = vsyncpa [#allocation5], 1 }

</bundles_post_ra>
